<compile_context>
chip_gen: v7x
topology: tpu7x:2x2x1
jax: 0.10.0
libtpu: 0.0.40
codegen_flags: <defaults>
</compile_context>

<pallas_src>
import functools

import jax
import jax.numpy as jnp
from jax import lax
from jax.experimental import pallas as pl
from jax.experimental.pallas import tpu as pltpu

_LANES = 128
_SUBLANES = 8
_MAX_BLOCK_ROWS = 4096          # 4096*128*4B = 2 MiB per f32 input block
_VMEM_LIMIT_BYTES = 48 << 20    # 12 MiB pipeline buffers + temporaries, w/ headroom


def _bce_block_kernel(conf_ref, gt_ref, mask_ref, out_ref, *,
                      block_rows, tail_valid_rows, last_block_partial):
    """One grid step: (block_rows, 128) slab -> (2, 8, 128) partial sums."""
    x = conf_ref[...].astype(jnp.float32)
    y = gt_ref[...].astype(jnp.float32)
    m = mask_ref[...].astype(jnp.float32)

    # torch BCE clamps the log terms at -100 so the loss stays finite.
    log_x = jnp.maximum(jnp.log(x), -100.0)
    log_1mx = jnp.maximum(jnp.log(1.0 - x), -100.0)
    loss = -(y * log_x + (1.0 - y) * log_1mx)

    g = block_rows // _SUBLANES

    def _store(contrib, m_part):
        # Leading-axis reduction only: stays in the VALU slot, no XLU,
        # tile-preserving reshape (splits the sublane-major axis).
        out_ref[0, 0, :, :] = jnp.sum(
            contrib.reshape(g, _SUBLANES, _LANES), axis=0)
        out_ref[0, 1, :, :] = jnp.sum(
            m_part.reshape(g, _SUBLANES, _LANES), axis=0)

    if last_block_partial:
        # Only the final (partial) block needs row masking; every other block
        # takes the unmasked fast path.
        is_last = pl.program_id(0) == pl.num_programs(0) - 1

        @pl.when(jnp.logical_not(is_last))
        def _():
            _store(m * loss, m)

        @pl.when(is_last)
        def _():
            row = lax.broadcasted_iota(jnp.int32, x.shape, 0)
            valid = row < tail_valid_rows
            m_valid = jnp.where(valid, m, 0.0)
            # loss in garbage (uninitialized VMEM) rows may be NaN/Inf, so it
            # must be selected out too (0 * NaN == NaN).
            loss_valid = jnp.where(valid, loss, 0.0)
            _store(m_valid * loss_valid, m_valid)
    else:
        _store(m * loss, m)


def _bce_terms_jnp(x, y, m):
    """Plain-jnp masked-BCE partial sums (only used for a <1024-elem tail)."""
    x = x.astype(jnp.float32)
    y = y.astype(jnp.float32)
    m = m.astype(jnp.float32)
    loss = -(y * jnp.maximum(jnp.log(x), -100.0)
             + (1.0 - y) * jnp.maximum(jnp.log(1.0 - x), -100.0))
    return jnp.sum(m * loss), jnp.sum(m)


@jax.jit
def masked_binary_cross_entropy(confidence, radar_gt, mask):
    """Returns scalar: sum(mask * BCE(confidence, radar_gt)) / sum(mask).

    NOTE: sum(mask) == 0 yields inf/NaN, matching PyTorch semantics.
    """
    n = confidence.size
    # Kernel consumes the (8*128)-aligned prefix; the <1024-element remainder
    # (misaligned shapes only) is handled in jnp — avoids jnp.pad full copies.
    rows_main = (n // (_SUBLANES * _LANES)) * _SUBLANES
    n_main = rows_main * _LANES

    conf_flat = jnp.ravel(confidence)
    gt_flat = jnp.ravel(radar_gt)
    mask_flat = jnp.ravel(mask)

    loss_sum = jnp.float32(0.0)
    mask_sum = jnp.float32(0.0)

    if rows_main > 0:
        block_rows = min(_MAX_BLOCK_ROWS, rows_main)
        # Keep >= 2 grid blocks when possible so the "parallel" grid axis can
        # feed both TensorCores on v7x (megacore).
        if block_rows == rows_main and rows_main >= 2 * _SUBLANES:
            block_rows = ((rows_main // 2) // _SUBLANES) * _SUBLANES
        num_blocks = pl.cdiv(rows_main, block_rows)
        tail_valid_rows = rows_main - (num_blocks - 1) * block_rows
        last_block_partial = tail_valid_rows != block_rows

        def _as2d(flat):
            flat = flat[:n_main] if n_main != n else flat
            return flat.reshape(rows_main, _LANES)

        kernel = functools.partial(
            _bce_block_kernel,
            block_rows=block_rows,
            tail_valid_rows=tail_valid_rows,
            last_block_partial=last_block_partial)

        in_spec = pl.BlockSpec((block_rows, _LANES), lambda i: (i, 0))
        out_spec = pl.BlockSpec((1, 2, _SUBLANES, _LANES),
                                lambda i: (i, 0, 0, 0))

        in_bytes = n_main * (confidence.dtype.itemsize
                             + radar_gt.dtype.itemsize
                             + mask.dtype.itemsize)
        out_bytes = num_blocks * 2 * _SUBLANES * _LANES * 4
        cost = pl.CostEstimate(flops=10 * n_main, transcendentals=2 * n_main,
                               bytes_accessed=in_bytes + out_bytes)

        parts = pl.pallas_call(
            kernel,
            out_shape=jax.ShapeDtypeStruct(
                (num_blocks, 2, _SUBLANES, _LANES), jnp.float32),
            grid_spec=pltpu.PrefetchScalarGridSpec(
                num_scalar_prefetch=0,
                grid=(num_blocks,),
                in_specs=[in_spec, in_spec, in_spec],
                out_specs=out_spec),
            compiler_params=pltpu.CompilerParams(
                dimension_semantics=("parallel",),
                vmem_limit_bytes=_VMEM_LIMIT_BYTES),
            cost_estimate=cost,
        )(_as2d(conf_flat), _as2d(gt_flat), _as2d(mask_flat))

        loss_sum = loss_sum + jnp.sum(parts[:, 0])
        mask_sum = mask_sum + jnp.sum(parts[:, 1])

    if n_main != n:
        tail_loss, tail_mask = _bce_terms_jnp(
            conf_flat[n_main:], gt_flat[n_main:], mask_flat[n_main:])
        loss_sum = loss_sum + tail_loss
        mask_sum = mask_sum + tail_mask

    return (loss_sum / mask_sum).astype(confidence.dtype)


def _reference(confidence, radar_gt, mask):
    x = confidence.astype(jnp.float32)
    y = radar_gt.astype(jnp.float32)
    m = mask.astype(jnp.float32)
    loss = -(y * jnp.maximum(jnp.log(x), -100.0)
             + (1.0 - y) * jnp.maximum(jnp.log(1.0 - x), -100.0))
    return jnp.sum(m * loss) / jnp.sum(m)


def _make_inputs(key, shape):
    k1, k2, k3 = jax.random.split(key, 3)
    confidence = jax.nn.sigmoid(jax.random.normal(k1, shape, jnp.float32))
    radar_gt = (jax.random.uniform(k2, shape) > 0.5).astype(jnp.float32)
    mask = (jax.random.uniform(k3, shape) > 0.3).astype(jnp.float32)
    return confidence, radar_gt, mask


if __name__ == "__main__":
    # Main case: NCHW-like, (8*128)-aligned -> two unmasked grid blocks.
    confidence, radar_gt, mask = _make_inputs(jax.random.PRNGKey(0),
                                              (2, 4, 16, 16))
    out = jax.block_until_ready(
        masked_binary_cross_entropy(confidence, radar_gt, mask))
    ref = _reference(confidence, radar_gt, mask)
    assert jnp.allclose(out, ref, rtol=1e-5, atol=1e-5), (out, ref)

    # Exercise the partial-last-block masked path (rows=40, block_rows=16).
    c2, g2, m2 = _make_inputs(jax.random.PRNGKey(1), (5, 4, 16, 16))
    out2 = jax.block_until_ready(masked_binary_cross_entropy(c2, g2, m2))
    ref2 = _reference(c2, g2, m2)
    assert jnp.allclose(out2, ref2, rtol=1e-5, atol=1e-5), (out2, ref2)

    # Exercise the <1024-element jnp tail path (misaligned element count).
    c3, g3, m3 = _make_inputs(jax.random.PRNGKey(2), (3, 5, 7, 11))
    out3 = jax.block_until_ready(masked_binary_cross_entropy(c3, g3, m3))
    ref3 = _reference(c3, g3, m3)
    assert jnp.allclose(out3, ref3, rtol=1e-5, atol=1e-5), (out3, ref3)

    print("KERNEL_OK")
</pallas_src>

<mosaic_0001>
module attributes {stable_mosaic.version = 11 : i64} {
  func.func @_bce_block_kernel(%arg0: i32, %arg1: memref<8x128xf32, #tpu.memory_space<vmem>>, %arg2: memref<8x128xf32, #tpu.memory_space<vmem>>, %arg3: memref<8x128xf32, #tpu.memory_space<vmem>>, %arg4: memref<1x2x8x128xf32, #tpu.memory_space<vmem>>) attributes {dimension_semantics = [#tpu.dimension_semantics<parallel>], iteration_bounds = array<i64: 2>, scalar_prefetch = 0 : i64, scratch_operands = 0 : i64, tpu.core_type = #tpu.core_type<tc>, window_params = [{transform_indices = @transform_0, window_bounds = array<i64: 8, 128>}, {transform_indices = @transform_1, window_bounds = array<i64: 8, 128>}, {transform_indices = @transform_2, window_bounds = array<i64: 8, 128>}, {transform_indices = @transform_3, window_bounds = array<i64: 1, 2, 8, 128>}]} {
    %c0 = arith.constant 0 : index
    %c0_0 = arith.constant 0 : index
    %0 = vector.load %arg1[%c0, %c0_0] : memref<8x128xf32, #tpu.memory_space<vmem>>, vector<8x128xf32>
    %c0_1 = arith.constant 0 : index
    %c0_2 = arith.constant 0 : index
    %1 = vector.load %arg2[%c0_1, %c0_2] : memref<8x128xf32, #tpu.memory_space<vmem>>, vector<8x128xf32>
    %c0_3 = arith.constant 0 : index
    %c0_4 = arith.constant 0 : index
    %2 = vector.load %arg3[%c0_3, %c0_4] : memref<8x128xf32, #tpu.memory_space<vmem>>, vector<8x128xf32>
    %3 = math.log %0 : vector<8x128xf32>
    %cst = arith.constant -1.000000e+02 : f32
    %4 = vector.broadcast %cst : f32 to vector<8x128xf32>
    %5 = arith.maximumf %3, %4 : vector<8x128xf32>
    %cst_5 = arith.constant 1.000000e+00 : f32
    %6 = vector.broadcast %cst_5 : f32 to vector<8x128xf32>
    %7 = arith.subf %6, %0 : vector<8x128xf32>
    %8 = math.log %7 : vector<8x128xf32>
    %cst_6 = arith.constant -1.000000e+02 : f32
    %9 = vector.broadcast %cst_6 : f32 to vector<8x128xf32>
    %10 = arith.maximumf %8, %9 : vector<8x128xf32>
    %11 = arith.mulf %1, %5 : vector<8x128xf32>
    %cst_7 = arith.constant 1.000000e+00 : f32
    %12 = vector.broadcast %cst_7 : f32 to vector<8x128xf32>
    %13 = arith.subf %12, %1 : vector<8x128xf32>
    %14 = arith.mulf %13, %10 : vector<8x128xf32>
    %15 = arith.addf %11, %14 : vector<8x128xf32>
    %cst_8 = arith.constant 0.000000e+00 : f32
    %16 = vector.broadcast %cst_8 : f32 to vector<8x128xf32>
    %17 = arith.subf %16, %15 : vector<8x128xf32>
    %18 = arith.mulf %2, %17 : vector<8x128xf32>
    %19 = vector.shape_cast %18 : vector<8x128xf32> to vector<1x8x128xf32>
    %cst_9 = arith.constant dense<0.000000e+00> : vector<8x128xf32>
    %20 = vector.multi_reduction <add>, %19, %cst_9 [0] : vector<1x8x128xf32> to vector<8x128xf32>
    %c0_10 = arith.constant 0 : index
    %c0_11 = arith.constant 0 : index
    %c0_12 = arith.constant 0 : index
    %c0_13 = arith.constant 0 : index
    %21 = vector.load %arg4[%c0_10, %c0_11, %c0_12, %c0_13] : memref<1x2x8x128xf32, #tpu.memory_space<vmem>>, vector<1x1x8x128xf32>
    %22 = vector.shape_cast %21 : vector<1x1x8x128xf32> to vector<8x128xf32>
    %23 = vector.shape_cast %20 : vector<8x128xf32> to vector<1x1x8x128xf32>
    tpu.vector_store %arg4[%c0_10, %c0_11, %c0_12, %c0_13], %23 {strides = array<i32>} : memref<1x2x8x128xf32, #tpu.memory_space<vmem>>, vector<1x1x8x128xf32>,
    %24 = vector.shape_cast %2 : vector<8x128xf32> to vector<1x8x128xf32>
    %cst_14 = arith.constant dense<0.000000e+00> : vector<8x128xf32>
    %25 = vector.multi_reduction <add>, %24, %cst_14 [0] : vector<1x8x128xf32> to vector<8x128xf32>
    %c0_15 = arith.constant 0 : index
    %c1 = arith.constant 1 : index
    %c0_16 = arith.constant 0 : index
    %c0_17 = arith.constant 0 : index
    %26 = vector.load %arg4[%c0_15, %c1, %c0_16, %c0_17] : memref<1x2x8x128xf32, #tpu.memory_space<vmem>>, vector<1x1x8x128xf32>
    %27 = vector.shape_cast %26 : vector<1x1x8x128xf32> to vector<8x128xf32>
    %28 = vector.shape_cast %25 : vector<8x128xf32> to vector<1x1x8x128xf32>
    tpu.vector_store %arg4[%c0_15, %c1, %c0_16, %c0_17], %28 {strides = array<i32>} : memref<1x2x8x128xf32, #tpu.memory_space<vmem>>, vector<1x1x8x128xf32>,
    return
  }
  func.func @transform_0(%arg0: i32) -> (i32, i32) {
    %c0_i32 = arith.constant 0 : i32
    %c0_i32_0 = arith.constant 0 : i32
    return %arg0, %c0_i32 : i32, i32
  }
  func.func @transform_1(%arg0: i32) -> (i32, i32) {
    %c0_i32 = arith.constant 0 : i32
    %c0_i32_0 = arith.constant 0 : i32
    return %arg0, %c0_i32 : i32, i32
  }
  func.func @transform_2(%arg0: i32) -> (i32, i32) {
    %c0_i32 = arith.constant 0 : i32
    %c0_i32_0 = arith.constant 0 : i32
    return %arg0, %c0_i32 : i32, i32
  }
  func.func @transform_3(%arg0: i32) -> (i32, i32, i32, i32) {
    %c0_i32 = arith.constant 0 : i32
    %c0_i32_0 = arith.constant 0 : i32
    %c0_i32_1 = arith.constant 0 : i32
    %c0_i32_2 = arith.constant 0 : i32
    return %arg0, %c0_i32, %c0_i32_0, %c0_i32_1 : i32, i32, i32, i32
  }
}

</mosaic_0001>

<bundles_post_ra>
// kernel: masked_binary_cross_entropy.1
= control target key start
LH: loop header
LB: loop body
LE: loop exit
PB: predicated region body
PF: predicated region fallthrough
CT: control target
= control target key end

     0   :  { %s356_s12 = smov 0   ;;  %s379_s0 = inlined_call_operand.vmem [shape: f32[16,128], index: 0, kind: input, shape index: {}]   ;;  %s380_s1 = inlined_call_operand.vmem [shape: f32[16,128], index: 1, kind: input, shape index: {}]   ;;  %s381_s2 = inlined_call_operand.vmem [shape: f32[16,128], index: 2, kind: input, shape index: {}]   ;;  %s382_s3 = inlined_call_operand.vmem [shape: f32[2,2,8,128], index: 3, kind: output, shape index: {}]  }
   0x1 LB: > { %s302_s13 = sadd.s32 4294967295, %s334_s12   ;;  %p306_p0 = scmp.ge.s32.totalorder %s334_s12, 1  ;;  %s334_s12 = sphi %s356_s12, %s13_s12  }
   0x2   : > { %p154_p1 = scmp.lt.s32.totalorder %s334_s12, 3 }
   0x4   : > { %p155_p2 = pnand %p306_p0, %p154_p1 }
   0x5   : > { %p185_p3 = scmp.lt.s32.totalorder (!%p155_p2), %s302_s13, 1 }
   0x6   : > { %158 = sbr.rel (%p155_p2) target bundleno = 43 (0x2b), region = 32 }
   0xd   : > { %s384_s13 = smov (!%p185_p3, %s302_s13), 1 }
   0xe   : > { %s307_s14 = sshll.u32 %s384_s13, 3  ;;  %s315_s15 = sshll.u32 %s384_s13, 4 }
   0xf   : > { %s188_s18 = scalar_lea.vmem %s379_s0, %s307_s14  ;;  %s196_s21 = scalar_lea.vmem %s381_s2, %s307_s14 }
  0x10   : > { %s201_s24 = scalar_lea.vmem %s382_s3, %s315_s15  ;;  %v202_v0 = vld [vmem:[%s188_s18] sm:$0xff]  ;;  %s192_s27 = scalar_lea.vmem %s380_s1, %s307_s14 }
  0x11   : > { %v204_v1 = vld [vmem:[%s196_s21] sm:$0xff]  ;;  %324 = vlog2.f32 %v202_v0  ;;  %v208_v2 = vsub.f32 1.0, %v202_v0 }
  0x12   : > { %312 = vst [vmem:[%s201_s24 + $0x8] sm:$0xff] %v204_v1  ;;  %v203_v4 = vld [vmem:[%s192_s27] sm:$0xff] }
  0x13   : > { %326 = vlog2.f32 %v208_v2  ;;  %v213_v9 = vsub.f32 1.0, %v203_v4 }
  0x1b   : > { %v325_v3 = vpop.eup %324 }
  0x1c   : > { %v206_v5 = vmul.f32 0.6931472, %v325_v3 }
  0x1d   : > { %v327_v6 = vpop.eup %326 }
  0x1e   : > { %v207_v7 = vmax.f32 %v206_v5, -100.0  ;;  %v210_v8 = vmul.f32 0.6931472, %v327_v6 }
  0x20   : > { %v211_v10 = vmax.f32 %v210_v8, -100.0  ;;  %v212_v11 = vmul.f32 %v207_v7, %v203_v4 }
  0x22   : > { %v214_v12 = vmul.f32 %v213_v9, %v211_v10 }
  0x24   : > { %v215_v13 = vadd.f32 %v214_v12, %v212_v11 }
  0x26   : > { %v216_v14 = vsub.f32 0.0, %v215_v13 }
  0x28   : > { %v217_v15 = vmul.f32 %v216_v14, %v204_v1 }
  0x2a   : > { %219 = vst [vmem:[%s201_s24] sm:$0xff] %v217_v15 }
  0x2b PF: > { %s13_s12 = sadd.s32 1, %s334_s12  }
  0x2c   : > { %p10_p4 = scmp.ge.s32.totalorder %s13_s12, 4  }
  0x2e   :  { %12 = sbr.rel (!%p10_p4) target bundleno = 1 (0x1), region = 69 }

</bundles_post_ra>
